<compile_context>
chip_gen: v5e
topology: v5e:2x2
jax: 0.10.0
libtpu: 0.0.40
codegen_flags: <defaults>
</compile_context>

<pallas_src>
import jax
import jax.numpy as jnp
from jax.experimental import pallas as pl
from jax.experimental.pallas import tpu as pltpu  # noqa: F401  (TPU backend; no pltpu-specific APIs needed here)


BN_EPS = 1e-5
LANE = 128   # lane width: every lane dimension is padded to a multiple of this
SUB = 8      # sublane tile


def _round_up(n, m):
    return (n + m - 1) // m * m


# ----------------------------------------------------------------------------
# Kernel
# ----------------------------------------------------------------------------
def _make_classifer_kernel(layout):
    FP, H1P, H2P, CP = layout["FP"], layout["H1P"], layout["H2P"], layout["CP"]
    r_w1, r_w2, r_w3 = layout["r_w1"], layout["r_w2"], layout["r_w3"]
    r_bn1, r_bn2 = layout["r_bn1"], layout["r_bn2"]

    def _batchnorm(h, p_ref, row, width, inv_b):
        # Single-pass batch statistics: the two cross-sublane reductions are
        # independent (not serialized through mu / a full-width subtract).
        s = jnp.sum(h, axis=0, keepdims=True)
        ss = jnp.sum(h * h, axis=0, keepdims=True)
        mu = s * inv_b
        var = ss * inv_b - mu * mu                    # biased variance (training-mode BN)
        bn = p_ref[row:row + SUB, 0:width]            # one aligned (8, width) load
        gamma = bn[0:1, :]
        beta = bn[1:2, :]
        scale = gamma * jax.lax.rsqrt(var + BN_EPS)   # (1, width)
        off = beta - mu * scale                       # (1, width), computed once
        return h * scale + off                        # single FMA-style pass over (B, width)

    def kernel(x_ref, p_ref, out_ref):
        x = x_ref[...]                                # (B, FP); column F holds constant 1.0
        inv_b = 1.0 / x.shape[0]

        # ---- Linear 1 (+ bias folded into the matmul via the constant-1 column) + ReLU
        h1 = jnp.dot(x, p_ref[r_w1:r_w1 + FP, 0:H1P],
                     preferred_element_type=jnp.float32)
        h1 = jnp.maximum(h1, 0.0)

        # ---- BatchNorm1d(H1). Padded column H1 becomes exactly 1.0 (gamma=0, beta=1)
        #      and feeds the b2 row of w2; other padded columns stay exactly 0.
        h1 = _batchnorm(h1, p_ref, r_bn1, H1P, inv_b)

        # ---- Linear 2 (+ fused b2) + ReLU
        h2 = jnp.dot(h1, p_ref[r_w2:r_w2 + H1P, 0:H2P],
                     preferred_element_type=jnp.float32)
        h2 = jnp.maximum(h2, 0.0)

        # ---- BatchNorm1d(H2). Padded column H2 becomes exactly 1.0 and feeds b3.
        h2 = _batchnorm(h2, p_ref, r_bn2, H2P, inv_b)

        # ---- Linear 3 (+ fused b3), lane-dense (B, CP) store
        out = jnp.dot(h2, p_ref[r_w3:r_w3 + H2P, 0:CP],
                      preferred_element_type=jnp.float32)
        out_ref[...] = out.astype(out_ref.dtype)

    return kernel


# ----------------------------------------------------------------------------
# Wrapper
# ----------------------------------------------------------------------------
def classifer_forward(x, slab, layout, num_classes):
    """x: (batch, global_temporal_size + regions*regional_temporal_size) f32.

    One pallas_call over the whole batch (grid=()); parameters arrive as a single
    lane-dense slab. Output is computed lane-padded to CP columns and sliced here.
    """
    B, F = x.shape
    FP, CP = layout["FP"], layout["CP"]

    # Lane-dense input: zero-pad F -> FP and set column F to 1.0 (feeds the fused
    # bias row of w1). This is layout plumbing, not compute-hoisting.
    pad = jnp.zeros((B, FP - F), x.dtype).at[:, 0].set(1.0)
    x_pad = jnp.concatenate([x, pad], axis=1)

    kernel = _make_classifer_kernel(layout)
    out_padded = pl.pallas_call(
        kernel,
        out_shape=jax.ShapeDtypeStruct((B, CP), jnp.float32),
        grid=(),
        in_specs=[pl.BlockSpec((B, FP), lambda: (0, 0)),
                  pl.BlockSpec(slab.shape, lambda: (0, 0))],
        out_specs=pl.BlockSpec((B, CP), lambda: (0, 0)),
    )(x_pad, slab)
    return out_padded[:, :num_classes]


# ----------------------------------------------------------------------------
# Parameter construction / packing
# ----------------------------------------------------------------------------
def init_params(key, in_features, hidden1, hidden2, num_classes):
    """Deterministic init mirroring Classifer._init_weights(); PyTorch layout."""
    k1, k2, k3 = jax.random.split(key, 3)
    # kaiming_normal_ fan_in, relu: std = sqrt(2 / fan_in)
    w1 = jax.random.normal(k1, (hidden1, in_features), jnp.float32) * jnp.sqrt(2.0 / in_features)
    b1 = jnp.full((hidden1,), 0.1, jnp.float32)
    g1 = jnp.full((hidden1,), 0.5, jnp.float32)   # BatchNorm1d weight
    be1 = jnp.zeros((hidden1,), jnp.float32)      # BatchNorm1d bias

    w2 = jax.random.normal(k2, (hidden2, hidden1), jnp.float32) * jnp.sqrt(2.0 / hidden1)
    b2 = jnp.full((hidden2,), 0.05, jnp.float32)
    g2 = jnp.full((hidden2,), 0.5, jnp.float32)
    be2 = jnp.zeros((hidden2,), jnp.float32)

    # xavier_normal_, gain('linear', 0.1) == 1.0: std = sqrt(2/(fan_in+fan_out))
    w3 = jax.random.normal(k3, (num_classes, hidden2), jnp.float32) * jnp.sqrt(
        2.0 / (hidden2 + num_classes))
    b3 = jnp.zeros((num_classes,), jnp.float32)

    return (w1, b1, g1, be1, w2, b2, g2, be2, w3, b3)


def pack_params(params, num_classes):
    """Repack PyTorch-layout params into a single lane-dense kernel slab.

    Slab rows (all `W` = 128-multiple lanes wide, f32):
      [0        : FP       )  w1^T zero-padded; row F  holds b1 (fed by x's constant-1 column)
      [FP       : FP+H1P   )  w2^T zero-padded; row H1 holds b2 (fed by h1_bn's constant-1 column)
      [FP+H1P   : +H2P     )  w3^T zero-padded; row H2 holds b3 (fed by h2_bn's constant-1 column)
      [r_bn1    : r_bn1+8  )  row 0: gamma1, row 1: beta1 (beta1[H1]=1.0 creates the constant-1 col)
      [r_bn2    : r_bn2+8  )  row 0: gamma2, row 1: beta2 (beta2[H2]=1.0)
    """
    (w1, b1, g1, be1, w2, b2, g2, be2, w3, b3) = params
    H1, F = w1.shape
    H2 = w2.shape[0]
    C = num_classes

    FP = _round_up(F + 1, LANE)    # +1 guarantees room for the bias-feed row/column
    H1P = _round_up(H1 + 1, LANE)
    H2P = _round_up(H2 + 1, LANE)
    CP = _round_up(C, LANE)
    W = max(H1P, H2P, CP)

    def _weight_block(w, rows, bias, bias_row):
        wt = jnp.asarray(w).T                                   # (in, out)
        blk = jnp.zeros((rows, W), jnp.float32)
        blk = blk.at[: wt.shape[0], : wt.shape[1]].set(wt)
        blk = blk.at[bias_row, : bias.shape[0]].set(bias)       # fused bias row
        return blk

    def _bn_block(g, be, ones_col):
        blk = jnp.zeros((SUB, W), jnp.float32)
        blk = blk.at[0, : g.shape[0]].set(g)
        blk = blk.at[1, : be.shape[0]].set(be)
        blk = blk.at[1, ones_col].set(1.0)   # padded column forced to exactly 1.0 post-BN
        return blk

    w1blk = _weight_block(w1, FP, b1, F)
    w2blk = _weight_block(w2, H1P, b2, H1)
    w3blk = _weight_block(w3, H2P, b3, H2)
    bn1 = _bn_block(g1, be1, H1)
    bn2 = _bn_block(g2, be2, H2)

    slab = jnp.concatenate([w1blk, w2blk, w3blk, bn1, bn2], axis=0)

    layout = dict(
        F=F, H1=H1, H2=H2, C=C,
        FP=FP, H1P=H1P, H2P=H2P, CP=CP, W=W,
        r_w1=0, r_w2=FP, r_w3=FP + H1P,
        r_bn1=FP + H1P + H2P, r_bn2=FP + H1P + H2P + SUB,
    )
    return slab, layout


# ----------------------------------------------------------------------------
# Pure-JAX reference (training-mode BN, PyTorch semantics)
# ----------------------------------------------------------------------------
def classifer_reference(x, params):
    (w1, b1, g1, be1, w2, b2, g2, be2, w3, b3) = params

    def bn(h, g, be):
        mu = h.mean(axis=0, keepdims=True)
        var = ((h - mu) ** 2).mean(axis=0, keepdims=True)
        return g * (h - mu) / jnp.sqrt(var + BN_EPS) + be

    h = jnp.maximum(x @ w1.T + b1, 0.0)
    h = bn(h, g1, be1)
    h = jnp.maximum(h @ w2.T + b2, 0.0)
    h = bn(h, g2, be2)
    return h @ w3.T + b3


if __name__ == "__main__":
    # Small shapes consistent with the module's constructor arguments.
    regions = 4
    regional_temporal_size = 16
    global_temporal_size = 32
    num_classes = 3
    hidden_size1 = 64
    hidden_size2 = 32
    # Whole stacked batch goes through ONE kernel invocation (amortizes launch/DMA cost).
    batch = 64
    in_features = global_temporal_size + regions * regional_temporal_size  # 96

    key = jax.random.PRNGKey(0)
    kx, kp = jax.random.split(key)
    x = jax.random.normal(kx, (batch, in_features), jnp.float32)
    params = init_params(kp, in_features, hidden_size1, hidden_size2, num_classes)
    slab, layout = pack_params(params, num_classes)

    out = classifer_forward(x, slab, layout, num_classes)
    out = jax.block_until_ready(out)

    ref = classifer_reference(x, params)
    assert out.shape == (batch, num_classes)
    assert jnp.allclose(out, ref, atol=1e-4, rtol=1e-4), "mismatch vs reference"

    print("KERNEL_OK")
</pallas_src>

<mosaic_0001>
module attributes {stable_mosaic.version = 11 : i64} {
  func.func @kernel(%arg0: memref<64x128xf32, #tpu.memory_space<vmem>>, %arg1: memref<400x128xf32, #tpu.memory_space<vmem>>, %arg2: memref<64x128xf32, #tpu.memory_space<vmem>>) attributes {dimension_semantics = [], scalar_prefetch = 0 : i64, scratch_operands = 0 : i64, tpu.core_type = #tpu.core_type<tc>} {
    %c0 = arith.constant 0 : index
    %c0_0 = arith.constant 0 : index
    %0 = vector.load %arg0[%c0, %c0_0] : memref<64x128xf32, #tpu.memory_space<vmem>>, vector<64x128xf32>
    %c0_1 = arith.constant 0 : index
    %c0_2 = arith.constant 0 : index
    %1 = vector.load %arg1[%c0_1, %c0_2] : memref<400x128xf32, #tpu.memory_space<vmem>>, vector<128x128xf32>
    %cst = arith.constant dense<0.000000e+00> : vector<64x128xf32>
    %2 = tpu.matmul %0, %1, %cst {dimension_numbers = #tpu.dot_dimension_numbers<[1], [0], [0], [1], [0, 0, 1, 1], [], []>} : vector<64x128xf32>, vector<128x128xf32>, vector<64x128xf32> -> vector<64x128xf32>
    %cst_3 = arith.constant 0.000000e+00 : f32
    %3 = vector.broadcast %cst_3 : f32 to vector<64x128xf32>
    %4 = arith.maximumf %2, %3 : vector<64x128xf32>
    %cst_4 = arith.constant dense<0.000000e+00> : vector<128xf32>
    %5 = vector.multi_reduction <add>, %4, %cst_4 [0] : vector<64x128xf32> to vector<128xf32>
    %6 = vector.shape_cast %5 : vector<128xf32> to vector<1x128xf32>
    %7 = arith.mulf %4, %4 : vector<64x128xf32>
    %cst_5 = arith.constant dense<0.000000e+00> : vector<128xf32>
    %8 = vector.multi_reduction <add>, %7, %cst_5 [0] : vector<64x128xf32> to vector<128xf32>
    %9 = vector.shape_cast %8 : vector<128xf32> to vector<1x128xf32>
    %cst_6 = arith.constant 1.562500e-02 : f32
    %10 = vector.broadcast %cst_6 : f32 to vector<1x128xf32>
    %11 = arith.mulf %6, %10 : vector<1x128xf32>
    %cst_7 = arith.constant 1.562500e-02 : f32
    %12 = vector.broadcast %cst_7 : f32 to vector<1x128xf32>
    %13 = arith.mulf %9, %12 : vector<1x128xf32>
    %14 = arith.mulf %11, %11 : vector<1x128xf32>
    %15 = arith.subf %13, %14 : vector<1x128xf32>
    %c384 = arith.constant 384 : index
    %c0_8 = arith.constant 0 : index
    %16 = vector.load %arg1[%c384, %c0_8] : memref<400x128xf32, #tpu.memory_space<vmem>>, vector<8x128xf32>
    %17 = vector.extract_strided_slice %16 {offsets = [0, 0], sizes = [1, 128], strides = [1, 1]} : vector<8x128xf32> to vector<1x128xf32>
    %18 = vector.extract_strided_slice %16 {offsets = [1, 0], sizes = [1, 128], strides = [1, 1]} : vector<8x128xf32> to vector<1x128xf32>
    %cst_9 = arith.constant 9.99999974E-6 : f32
    %19 = vector.broadcast %cst_9 : f32 to vector<1x128xf32>
    %20 = arith.addf %15, %19 : vector<1x128xf32>
    %21 = math.rsqrt %20 : vector<1x128xf32>
    %22 = arith.mulf %17, %21 : vector<1x128xf32>
    %23 = arith.mulf %11, %22 : vector<1x128xf32>
    %24 = arith.subf %18, %23 : vector<1x128xf32>
    %25 = vector.broadcast %22 : vector<1x128xf32> to vector<64x128xf32>
    %26 = arith.mulf %4, %25 : vector<64x128xf32>
    %27 = vector.broadcast %24 : vector<1x128xf32> to vector<64x128xf32>
    %28 = arith.addf %26, %27 : vector<64x128xf32>
    %c128 = arith.constant 128 : index
    %c0_10 = arith.constant 0 : index
    %29 = vector.load %arg1[%c128, %c0_10] : memref<400x128xf32, #tpu.memory_space<vmem>>, vector<128x128xf32>
    %cst_11 = arith.constant dense<0.000000e+00> : vector<64x128xf32>
    %30 = tpu.matmul %28, %29, %cst_11 {dimension_numbers = #tpu.dot_dimension_numbers<[1], [0], [0], [1], [0, 0, 1, 1], [], []>} : vector<64x128xf32>, vector<128x128xf32>, vector<64x128xf32> -> vector<64x128xf32>
    %cst_12 = arith.constant 0.000000e+00 : f32
    %31 = vector.broadcast %cst_12 : f32 to vector<64x128xf32>
    %32 = arith.maximumf %30, %31 : vector<64x128xf32>
    %cst_13 = arith.constant dense<0.000000e+00> : vector<128xf32>
    %33 = vector.multi_reduction <add>, %32, %cst_13 [0] : vector<64x128xf32> to vector<128xf32>
    %34 = vector.shape_cast %33 : vector<128xf32> to vector<1x128xf32>
    %35 = arith.mulf %32, %32 : vector<64x128xf32>
    %cst_14 = arith.constant dense<0.000000e+00> : vector<128xf32>
    %36 = vector.multi_reduction <add>, %35, %cst_14 [0] : vector<64x128xf32> to vector<128xf32>
    %37 = vector.shape_cast %36 : vector<128xf32> to vector<1x128xf32>
    %cst_15 = arith.constant 1.562500e-02 : f32
    %38 = vector.broadcast %cst_15 : f32 to vector<1x128xf32>
    %39 = arith.mulf %34, %38 : vector<1x128xf32>
    %cst_16 = arith.constant 1.562500e-02 : f32
    %40 = vector.broadcast %cst_16 : f32 to vector<1x128xf32>
    %41 = arith.mulf %37, %40 : vector<1x128xf32>
    %42 = arith.mulf %39, %39 : vector<1x128xf32>
    %43 = arith.subf %41, %42 : vector<1x128xf32>
    %c392 = arith.constant 392 : index
    %c0_17 = arith.constant 0 : index
    %44 = vector.load %arg1[%c392, %c0_17] : memref<400x128xf32, #tpu.memory_space<vmem>>, vector<8x128xf32>
    %45 = vector.extract_strided_slice %44 {offsets = [0, 0], sizes = [1, 128], strides = [1, 1]} : vector<8x128xf32> to vector<1x128xf32>
    %46 = vector.extract_strided_slice %44 {offsets = [1, 0], sizes = [1, 128], strides = [1, 1]} : vector<8x128xf32> to vector<1x128xf32>
    %cst_18 = arith.constant 9.99999974E-6 : f32
    %47 = vector.broadcast %cst_18 : f32 to vector<1x128xf32>
    %48 = arith.addf %43, %47 : vector<1x128xf32>
    %49 = math.rsqrt %48 : vector<1x128xf32>
    %50 = arith.mulf %45, %49 : vector<1x128xf32>
    %51 = arith.mulf %39, %50 : vector<1x128xf32>
    %52 = arith.subf %46, %51 : vector<1x128xf32>
    %53 = vector.broadcast %50 : vector<1x128xf32> to vector<64x128xf32>
    %54 = arith.mulf %32, %53 : vector<64x128xf32>
    %55 = vector.broadcast %52 : vector<1x128xf32> to vector<64x128xf32>
    %56 = arith.addf %54, %55 : vector<64x128xf32>
    %c256 = arith.constant 256 : index
    %c0_19 = arith.constant 0 : index
    %57 = vector.load %arg1[%c256, %c0_19] : memref<400x128xf32, #tpu.memory_space<vmem>>, vector<128x128xf32>
    %cst_20 = arith.constant dense<0.000000e+00> : vector<64x128xf32>
    %58 = tpu.matmul %56, %57, %cst_20 {dimension_numbers = #tpu.dot_dimension_numbers<[1], [0], [0], [1], [0, 0, 1, 1], [], []>} : vector<64x128xf32>, vector<128x128xf32>, vector<64x128xf32> -> vector<64x128xf32>
    %c0_21 = arith.constant 0 : index
    %c0_22 = arith.constant 0 : index
    %59 = vector.load %arg2[%c0_21, %c0_22] : memref<64x128xf32, #tpu.memory_space<vmem>>, vector<64x128xf32>
    tpu.vector_store %arg2[%c0_21, %c0_22], %58 {strides = array<i32>} : memref<64x128xf32, #tpu.memory_space<vmem>>, vector<64x128xf32>,
    return
  }
}

</mosaic_0001>

<bundles_post_ra>
// kernel: tpu_custom_call.1
= control target key start
LH: loop header
LB: loop body
LE: loop exit
PB: predicated region body
PF: predicated region fallthrough
CT: control target
= control target key end

     0   :  { %7 = vsyncpa [#allocation3], 0  ;;  %s668_s0 = inlined_call_operand.hbm [shape: f32[64,128], index: 0, kind: input, shape index: {}]   ;;  %s669_s1 = inlined_call_operand.hbm [shape: f32[400,128], index: 1, kind: input, shape index: {}]   ;;  %s670_s2 = inlined_call_operand.hbm [shape: f32[64,128], index: 2, kind: output, shape index: {}]  }
   0x1   :  { %8 = vsyncpa [#allocation6], 0 }
   0x2   :  { %9 = vsyncpa [#allocation4], 0  ;;  %s14_s11 = sshll.u32 %s668_s0, 4  ;;  %s534_s12 = smov [#allocation2]   ;;  %s15_s11 = int_to_ptr.hbm [resolvable:$true] %s14_s11 }
   0x3   :  { %s16_s13 = sshll.u32 %s534_s12, 4  ;;  %s27_s16 = sshll.u32 %s669_s1, 4  ;;  %s17_s13 = int_to_ptr.vmem [resolvable:$true] %s16_s13  ;;  %s28_s16 = int_to_ptr.hbm [resolvable:$true] %s27_s16 }
   0x4   :  { %s535_s17 = smov 128   ;;  %s536_s18 = smov 8  }
   0x5   :  { %22 = dma.hbm_to_vmem [thread:$0]  %s15_s11, 1024, %s17_s13, [#allocation3], %s535_s17, %s535_s17, %s536_s18  }
   0x6   :  { %s537_s19 = smov [#allocation5]  }
   0x7   :  { %s29_s20 = sshll.u32 %s537_s19, 4  ;;  %s30_s20 = int_to_ptr.vmem [resolvable:$true] %s29_s20 }
   0x8   :  { %35 = dma.hbm_to_vmem [thread:$0]  %s28_s16, 6400, %s30_s20, [#allocation6], %s535_s17, %s535_s17, %s536_s18  }
   0x9   :  { %528 = dma.done.wait [#allocation3], 1024  }
   0xa   :  { %529 = vsyncadd [#allocation3], 4294966272 }
   0xb   :  { %530 = dma.done.wait [#allocation6], 6400  }
   0xc   :  { %531 = vsyncadd [#allocation6], 4294960896  ;;  %v67_v0 = vld [vmem:[#allocation5 + $0x78] sm:$0xff]  ;;  %v66_v1 = vld [vmem:[#allocation5 + $0x70] sm:$0xff]  ;;  %s538_s0 = smov [#allocation7]   ;;  %s401_s23 = sshll.u32 %s670_s2, 4  ;;  %s402_s23 = int_to_ptr.hbm [resolvable:$true] %s401_s23 }
   0xd   :  { %68 = vmatpush.msra.mxu0 %v67_v0  ;;  %415 = vmatpush.msra.mxu3 %v67_v0  ;;  %v65_v2 = vld [vmem:[#allocation5 + $0x68] sm:$0xff]  ;;  %v64_v3 = vld [vmem:[#allocation5 + $0x60] sm:$0xff]  ;;  %v63_v4 = vld [vmem:[#allocation5 + $0x58] sm:$0xff]  ;;  %s399_s1 = sshll.u32 %s538_s0, 4  ;;  %s400_s1 = int_to_ptr.vmem [resolvable:$true] %s399_s1 }
   0xe   :  { %v62_v5 = vld [vmem:[#allocation5 + $0x50] sm:$0xff]  ;;  %v61_v6 = vld [vmem:[#allocation5 + $0x48] sm:$0xff]  ;;  %v60_v7 = vld [vmem:[#allocation5 + $0x40] sm:$0xff] }
   0xf   :  { %69 = vmatpush.msra.mxu0 %v66_v1  ;;  %416 = vmatpush.msra.mxu3 %v66_v1  ;;  %v59_v8 = vld [vmem:[#allocation5 + $0x38] sm:$0xff]  ;;  %v58_v9 = vld [vmem:[#allocation5 + $0x30] sm:$0xff]  ;;  %v57_v10 = vld [vmem:[#allocation5 + $0x28] sm:$0xff] }
  0x10   :  { %v56_v11 = vld [vmem:[#allocation5 + $0x20] sm:$0xff]  ;;  %v55_v12 = vld [vmem:[#allocation5 + $0x18] sm:$0xff]  ;;  %v54_v13 = vld [vmem:[#allocation5 + $0x10] sm:$0xff] }
  0x11   :  { %70 = vmatpush.msra.mxu0 %v65_v2  ;;  %417 = vmatpush.msra.mxu3 %v65_v2  ;;  %v53_v14 = vld [vmem:[#allocation5 + $0x8] sm:$0xff]  ;;  %v52_v15 = vld [vmem:[#allocation5] sm:$0xff]  ;;  %v50_v17 = vld [vmem:[#allocation2 + $0x30] sm:$0xff] }
  0x12   :  { %v44_v16 = vld [vmem:[#allocation2] sm:$0xff]  ;;  %v45_v18 = vld [vmem:[#allocation2 + $0x8] sm:$0xff]  ;;  %v51_v19 = vld [vmem:[#allocation2 + $0x38] sm:$0xff] }
  0x13   :  { %71 = vmatpush.msra.mxu0 %v64_v3  ;;  %418 = vmatpush.msra.mxu3 %v64_v3  ;;  %v46_v20 = vld [vmem:[#allocation2 + $0x10] sm:$0xff]  ;;  %v47_v21 = vld [vmem:[#allocation2 + $0x18] sm:$0xff]  ;;  %v48_v22 = vld [vmem:[#allocation2 + $0x20] sm:$0xff] }
  0x14   :  { %v49_v23 = vld [vmem:[#allocation2 + $0x28] sm:$0xff]  ;;  %v206_v39 = vld [vmem:[#allocation5 + $0xf8] sm:$0xff]  ;;  %v205_v43 = vld [vmem:[#allocation5 + $0xf0] sm:$0xff] }
  0x15   :  { %72 = vmatpush.msra.mxu0 %v63_v4  ;;  %419 = vmatpush.msra.mxu3 %v63_v4  ;;  %v204_v48 = vld [vmem:[#allocation5 + $0xe8] sm:$0xff]  ;;  %v203_v55 = vld [vmem:[#allocation5 + $0xe0] sm:$0xff]  ;;  %v202_v59 = vld [vmem:[#allocation5 + $0xd8] sm:$0xff] }
  0x16   :  { %207 = vmatpush.msra.mxu1 %v206_v39  ;;  %v201_v0 = vld [vmem:[#allocation5 + $0xd0] sm:$0xff]  ;;  %v200_v3 = vld [vmem:[#allocation5 + $0xc8] sm:$0xff] }
  0x17   :  { %73 = vmatpush.msra.mxu0 %v62_v5  ;;  %420 = vmatpush.msra.mxu3 %v62_v5 }
  0x18   :  { %208 = vmatpush.msra.mxu1 %v205_v43 }
  0x19   :  { %74 = vmatpush.msra.mxu0 %v61_v6  ;;  %421 = vmatpush.msra.mxu3 %v61_v6  ;;  %v199_v6 = vld [vmem:[#allocation5 + $0xc0] sm:$0xff] }
  0x1a   :  { %209 = vmatpush.msra.mxu1 %v204_v48 }
  0x1b   :  { %75 = vmatpush.msra.mxu0 %v60_v7  ;;  %422 = vmatpush.msra.mxu3 %v60_v7 }
  0x1c   :  { %210 = vmatpush.msra.mxu1 %v203_v55 }
  0x1d   :  { %76 = vmatpush.msra.mxu0 %v59_v8  ;;  %423 = vmatpush.msra.mxu3 %v59_v8 }
  0x1e   :  { %211 = vmatpush.msra.mxu1 %v202_v59 }
  0x1f   :  { %77 = vmatpush.msra.mxu0 %v58_v9  ;;  %424 = vmatpush.msra.mxu3 %v58_v9  ;;  %v198_v9 = vld [vmem:[#allocation5 + $0xb8] sm:$0xff] }
  0x20   :  { %212 = vmatpush.msra.mxu1 %v201_v0 }
  0x21   :  { %78 = vmatpush.msra.mxu0 %v57_v10  ;;  %425 = vmatpush.msra.mxu3 %v57_v10 }
  0x22   :  { %213 = vmatpush.msra.mxu1 %v200_v3 }
  0x23   :  { %79 = vmatpush.msra.mxu0 %v56_v11  ;;  %426 = vmatpush.msra.mxu3 %v56_v11 }
  0x24   :  { %214 = vmatpush.msra.mxu1 %v199_v6 }
  0x25   :  { %80 = vmatpush.msra.mxu0 %v55_v12  ;;  %427 = vmatpush.msra.mxu3 %v55_v12  ;;  %v197_v12 = vld [vmem:[#allocation5 + $0xb0] sm:$0xff] }
  0x26   :  { %215 = vmatpush.msra.mxu1 %v198_v9 }
  0x27   :  { %81 = vmatpush.msra.mxu0 %v54_v13  ;;  %428 = vmatpush.msra.mxu3 %v54_v13 }
  0x28   :  { %216 = vmatpush.msra.mxu1 %v197_v12 }
  0x29   :  { %82 = vmatpush.msra.mxu0 %v53_v14  ;;  %429 = vmatpush.msra.mxu3 %v53_v14 }
  0x2b   :  { %83 = vmatpush.msra.mxu0 %v52_v15  ;;  %430 = vmatpush.msra.mxu3 %v52_v15  ;;  %v196_v15 = vld [vmem:[#allocation5 + $0xa8] sm:$0xff] }
  0x2c   :  { %84 = vmatmul.f32.vlgmr.msra.gmra.mxu0 %v44_v16  ;;  %102 = vmatmul.f32.vlgmr.msra.gmra.mxu3 %v50_v17 }
  0x2d   :  { %431 = vmatpush.msrb.mxu3 %v206_v39  ;;  %217 = vmatpush.msra.mxu1 %v196_v15 }
  0x2f   :  { %432 = vmatpush.msrb.mxu3 %v205_v43 }
  0x31   :  { %433 = vmatpush.msrb.mxu3 %v204_v48 }
  0x33   :  { %434 = vmatpush.msrb.mxu3 %v203_v55 }
  0x34   :  { %87 = vmatmul.f32.gmra.mxu0 %v45_v18  ;;  %105 = vmatmul.f32.gmra.mxu3 %v51_v19  ;;  %v195_v18 = vld [vmem:[#allocation5 + $0xa0] sm:$0xff] }
  0x35   :  { %435 = vmatpush.msrb.mxu3 %v202_v59  ;;  %218 = vmatpush.msra.mxu1 %v195_v18 }
  0x37   :  { %436 = vmatpush.msrb.mxu3 %v201_v0 }
  0x39   :  { %437 = vmatpush.msrb.mxu3 %v200_v3 }
  0x3b   :  { %438 = vmatpush.msrb.mxu3 %v199_v6 }
  0x3c   :  { %90 = vmatmul.f32.gmra.mxu0 %v46_v20 }
  0x3d   :  { %439 = vmatpush.msrb.mxu3 %v198_v9 }
  0x3f   :  { %440 = vmatpush.msrb.mxu3 %v197_v12 }
  0x41   :  { %441 = vmatpush.msrb.mxu3 %v196_v15 }
  0x43   :  { %442 = vmatpush.msrb.mxu3 %v195_v18 }
  0x44   :  { %93 = vmatmul.f32.gmra.mxu0 %v47_v21  ;;  %v194_v21 = vld [vmem:[#allocation5 + $0x98] sm:$0xff] }
  0x45   :  { %219 = vmatpush.msra.mxu1 %v194_v21  ;;  %443 = vmatpush.msrb.mxu3 %v194_v21 }
  0x4c   :  { %96 = vmatmul.f32.gmra.mxu0 %v48_v22 }
  0x54   :  { %99 = vmatmul.f32.gmra.mxu0 %v49_v23 }
  0xa9   :  { %v85_v24 = vpop.f32.mrf.mxu0 }
  0xaa   :  { %v568_v30 = vmax.f32 %v85_v24, 0.0  ;;  %v193_v24 = vld [vmem:[#allocation5 + $0x90] sm:$0xff] }
  0xab   :  { %220 = vmatpush.msra.mxu1 %v193_v24  ;;  %444 = vmatpush.msrb.mxu3 %v193_v24 }
  0xac   :  { %v130_v35 = vmul.f32 %v568_v30, %v568_v30 }
  0xaf   :  { %v103_v28 = vpop.f32.mrf.mxu3 }
  0xb0   :  { %v590_v49 = vmax.f32 %v103_v28, 0.0  ;;  %v191_v28 = vld [vmem:[#allocation5 + $0x80] sm:$0xff] }
  0xb1   :  { %v88_v25 = vpop.f32.mrf.mxu0 }
  0xb2   :  { %v566_v29 = vmax.f32 %v88_v25, 0.0  ;;  %v136_v60 = vmul.f32 %v590_v49, %v590_v49 }
  0xb4   :  { %v131_v33 = vmul.f32 %v566_v29, %v566_v29  ;;  %v117_v36 = vadd.f32 %v566_v29, %v568_v30 }
  0xb6   :  { %v138_v40 = vadd.f32 %v131_v33, %v130_v35 }
  0xb7   :  { %v106_v44 = vpop.f32.mrf.mxu3 }
  0xb8   :  { %v595_v54 = vmax.f32 %v106_v44, 0.0 }
  0xb9   :  { %v91_v26 = vpop.f32.mrf.mxu0 }
  0xba   :  { %v570_v31 = vmax.f32 %v91_v26, 0.0  ;;  %v137_v63 = vmul.f32 %v595_v54, %v595_v54 }
  0xbc   :  { %v132_v37 = vmul.f32 %v570_v31, %v570_v31  ;;  %v118_v41 = vadd.f32 %v117_v36, %v570_v31 }
  0xbe   :  { %v139_v45 = vadd.f32 %v138_v40, %v132_v37 }
  0xc1   :  { %v94_v27 = vpop.f32.mrf.mxu0 }
  0xc2   :  { %v574_v34 = vmax.f32 %v94_v27, 0.0  ;;  %v192_v27 = vld [vmem:[#allocation5 + $0x88] sm:$0xff] }
  0xc3   :  { %221 = vmatpush.msra.mxu1 %v192_v27  ;;  %445 = vmatpush.msrb.mxu3 %v192_v27 }
  0xc4   :  { %v133_v42 = vmul.f32 %v574_v34, %v574_v34  ;;  %v119_v46 = vadd.f32 %v118_v41, %v574_v34  ;;  %v155_v41 = vld [vmem:[#allocation5 + $0x180] sm:$0xff] }
  0xc5   :  { %222 = vmatpush.msra.mxu1 %v191_v28  ;;  %446 = vmatpush.msrb.mxu3 %v191_v28 }
  0xc6   :  { %v140_v51 = vadd.f32 %v139_v45, %v133_v42 }
  0xc9   :  { %v97_v32 = vpop.f32.mrf.mxu0 }
  0xca   :  { %v582_v38 = vmax.f32 %v97_v32, 0.0 }
  0xcc   :  { %v134_v47 = vmul.f32 %v582_v38, %v582_v38  ;;  %v120_v52 = vadd.f32 %v119_v46, %v582_v38 }
  0xce   :  { %v141_v56 = vadd.f32 %v140_v51, %v134_v47 }
  0xd1   :  { %v100_v50 = vpop.f32.mrf.mxu0 }
  0xd2   :  { %v593_v53 = vmax.f32 %v100_v50, 0.0 }
  0xd4   :  { %v121_v57 = vadd.f32 %v120_v52, %v593_v53  ;;  %v135_v58 = vmul.f32 %v593_v53, %v593_v53 }
  0xd6   :  { %v122_v61 = vadd.f32 %v121_v57, %v590_v49  ;;  %v142_v62 = vadd.f32 %v141_v56, %v135_v58 }
  0xd8   :  { %v143_v1 = vadd.f32 %v142_v62, %v136_v60  ;;  %v123_v2 = vadd.f32 %v122_v61, %v595_v54 }
  0xda   :  { %v124_v4 = vrot.slane %v123_v2, 4  ;;  %v144_v5 = vadd.f32 %v143_v1, %v137_v63 }
  0xdc   :  { %v125_v7 = vadd.f32 %v124_v4, %v123_v2  ;;  %v145_v8 = vrot.slane %v144_v5, 4 }
  0xde   :  { %v126_v10 = vrot.slane %v125_v7, 2  ;;  %v146_v11 = vadd.f32 %v145_v8, %v144_v5 }
  0xe0   :  { %v127_v13 = vadd.f32 %v126_v10, %v125_v7  ;;  %v147_v14 = vrot.slane %v146_v11, 2 }
  0xe2   :  { %v128_v16 = vrot.slane %v127_v13, 1  ;;  %v148_v17 = vadd.f32 %v147_v14, %v146_v11 }
  0xe4   :  { %v129_v19 = vadd.f32 %v128_v16, %v127_v13  ;;  %v149_v20 = vrot.slane %v148_v17, 1  ;;  %v345_v16 = vld [vmem:[#allocation5 + $0x178] sm:$0xff] }
  0xe5   :  { %346 = vmatpush.msra.mxu2 %v345_v16 }
  0xe6   :  { %v150_v22 = vadd.f32 %v149_v20, %v148_v17  ;;  %v151_v23 = vmul.f32 0.015625, %v129_v19  ;;  %v344_v20 = vld [vmem:[#allocation5 + $0x170] sm:$0xff] }
  0xe7   :  { %347 = vmatpush.msra.mxu2 %v344_v20 }
  0xe8   :  { %v152_v25 = vmul.f32 0.015625, %v150_v22  ;;  %v153_v26 = vmul.f32 %v151_v23, %v151_v23 }
  0xea   :  { %v154_v32 = vsub.f32 %v152_v25, %v153_v26  ;;  %v343_v25 = vld [vmem:[#allocation5 + $0x168] sm:$0xff] }
  0xeb   :  { %348 = vmatpush.msra.mxu2 %v343_v25 }
  0xec   :  { %v156_v33 = vadd.f32 1e-05, %v154_v32 }
  0xee   :  { %452 = vrsqrt.f32 %v156_v33  ;;  %vm163_vm1 = vweird.f32 %v156_v33 }
  0xf4   :  { %v453_v35 = vpop.eup %452 }
  0xf5   :  { %v158_v36 = vmul.f32 %v453_v35, %v156_v33  ;;  %vm164_vm0 = vweird.f32 %v453_v35 }
  0xf6   :  { %vm165_vm2 = vmor %vm163_vm1, %vm164_vm0 }
  0xf7   :  { %v159_v37 = vmul.f32 %v453_v35, %v158_v36 }
  0xf9   :  { %v160_v39 = vmul.f32 0.5, %v159_v37 }
  0xfb   :  { %v161_v40 = vsub.f32 1.5, %v160_v39 }
  0xfd   :  { %v162_v42 = vmul.f32 %v453_v35, %v161_v40  ;;  %v341_v40 = vld [vmem:[#allocation5 + $0x158] sm:$0xff] }
  0xff   :  { %v166_v43 = vsel %vm165_vm2, %v453_v35, %v162_v42  ;;  %v342_v35 = vld [vmem:[#allocation5 + $0x160] sm:$0xff] }
 0x100   :  { %v167_v44 = vmul.f32 %v166_v43, %v155_v41  ;;  %349 = vmatpush.msra.mxu2 %v342_v35 }
 0x102   :  { %v168_v45 = vmul.f32 %v167_v44, %v151_v23  ;;  %v173_v47 = vperm.slane %v167_v44, 0  ;;  %350 = vmatpush.msra.mxu2 %v341_v40  ;;  %v340_v44 = vld [vmem:[#allocation5 + $0x150] sm:$0xff] }
 0x104   :  { %v170_v46 = vrot.slane %v168_v45, 7  ;;  %v181_v50 = vmul.f32 %v173_v47, %v595_v54  ;;  %v174_v52 = vmul.f32 %v173_v47, %v568_v30  ;;  %v175_v57 = vmul.f32 %v173_v47, %v566_v29  ;;  %351 = vmatpush.msra.mxu2 %v340_v44 }
 0x105   :  { %v176_v59 = vmul.f32 %v173_v47, %v570_v31  ;;  %v177_v61 = vmul.f32 %v173_v47, %v574_v34  ;;  %v178_v54 = vmul.f32 %v173_v47, %v582_v38  ;;  %v179_v30 = vmul.f32 %v173_v47, %v593_v53 }
 0x106   :  { %v172_v48 = vsub.f32 %v155_v41, %v170_v46  ;;  %v180_v29 = vmul.f32 %v173_v47, %v590_v49  ;;  %v339_v47 = vld [vmem:[#allocation5 + $0x148] sm:$0xff] }
 0x107   :  { %352 = vmatpush.msra.mxu2 %v339_v47 }
 0x108   :  { %v182_v51 = vperm.slane %v172_v48, 1 }
 0x10a   :  { %v183_v55 = vadd.f32 %v182_v51, %v174_v52  ;;  %v190_v56 = vadd.f32 %v182_v51, %v181_v50  ;;  %v184_v58 = vadd.f32 %v182_v51, %v175_v57  ;;  %v185_v60 = vadd.f32 %v182_v51, %v176_v59  ;;  %v336_v59 = vld [vmem:[#allocation5 + $0x130] sm:$0xff] }
 0x10b   :  { %v186_v62 = vadd.f32 %v182_v51, %v177_v61  ;;  %v187_v63 = vadd.f32 %v182_v51, %v178_v54  ;;  %v188_v0 = vadd.f32 %v182_v51, %v179_v30  ;;  %v189_v1 = vadd.f32 %v182_v51, %v180_v29  ;;  %v338_v51 = vld [vmem:[#allocation5 + $0x140] sm:$0xff] }
 0x10c   :  { %223 = vmatmul.f32.vlgmr.msra.gmra.mxu1 %v183_v55  ;;  %244 = vmatmul.f32.vlgmr.msrb.gmra.mxu3 %v190_v56  ;;  %v337_v56 = vld [vmem:[#allocation5 + $0x138] sm:$0xff]  ;;  %v334_v30 = vld [vmem:[#allocation5 + $0x120] sm:$0xff] }
 0x10d   :  { %353 = vmatpush.msra.mxu2 %v338_v51 }
 0x10f   :  { %354 = vmatpush.msra.mxu2 %v337_v56 }
 0x111   :  { %355 = vmatpush.msra.mxu2 %v336_v59 }
 0x114   :  { %226 = vmatmul.f32.gmra.mxu1 %v184_v58 }
 0x11c   :  { %229 = vmatmul.f32.gmra.mxu1 %v185_v60 }
 0x124   :  { %232 = vmatmul.f32.gmra.mxu1 %v186_v62  ;;  %v335_v62 = vld [vmem:[#allocation5 + $0x128] sm:$0xff] }
 0x125   :  { %356 = vmatpush.msra.mxu2 %v335_v62 }
 0x127   :  { %357 = vmatpush.msra.mxu2 %v334_v30 }
 0x12c   :  { %235 = vmatmul.f32.gmra.mxu1 %v187_v63 }
 0x134   :  { %238 = vmatmul.f32.gmra.mxu1 %v188_v0 }
 0x13c   :  { %241 = vmatmul.f32.gmra.mxu1 %v189_v1  ;;  %v333_v1 = vld [vmem:[#allocation5 + $0x118] sm:$0xff] }
 0x13d   :  { %358 = vmatpush.msra.mxu2 %v333_v1 }
 0x189   :  { %v224_v2 = vpop.f32.mrf.mxu1 }
 0x18a   :  { %v616_v6 = vmax.f32 %v224_v2, 0.0 }
 0x18c   :  { %v269_v49 = vmul.f32 %v616_v6, %v616_v6 }
 0x18f   :  { %v245_v21 = vpop.f32.mrf.mxu3 }
 0x190   :  { %v643_v27 = vmax.f32 %v245_v21, 0.0 }
 0x191   :  { %v227_v31 = vpop.f32.mrf.mxu1 }
 0x192   :  { %v614_v34 = vmax.f32 %v227_v31, 0.0  ;;  %v276_v41 = vmul.f32 %v643_v27, %v643_v27 }
 0x194   :  { %v270_v53 = vmul.f32 %v614_v34, %v614_v34  ;;  %v256_v9 = vadd.f32 %v614_v34, %v616_v6 }
 0x196   :  { %v277_v12 = vadd.f32 %v270_v53, %v269_v49  ;;  %v330_v53 = vld [vmem:[#allocation5 + $0x100] sm:$0xff] }
 0x199   :  { %v230_v3 = vpop.f32.mrf.mxu1 }
 0x19a   :  { %v618_v38 = vmax.f32 %v230_v3, 0.0  ;;  %v332_v3 = vld [vmem:[#allocation5 + $0x110] sm:$0xff] }
 0x19b   :  { %359 = vmatpush.msra.mxu2 %v332_v3 }
 0x19c   :  { %v271_v10 = vmul.f32 %v618_v38, %v618_v38  ;;  %v257_v13 = vadd.f32 %v256_v9, %v618_v38 }
 0x19e   :  { %v278_v17 = vadd.f32 %v277_v12, %v271_v10 }
 0x1a1   :  { %v233_v4 = vpop.f32.mrf.mxu1 }
 0x1a2   :  { %v622_v7 = vmax.f32 %v233_v4, 0.0  ;;  %v331_v4 = vld [vmem:[#allocation5 + $0x108] sm:$0xff] }
 0x1a3   :  { %360 = vmatpush.msra.mxu2 %v331_v4 }
 0x1a4   :  { %v272_v14 = vmul.f32 %v622_v7, %v622_v7  ;;  %v258_v18 = vadd.f32 %v257_v13, %v622_v7 }
 0x1a5   :  { %361 = vmatpush.msra.mxu2 %v330_v53 }
 0x1a6   :  { %v279_v22 = vadd.f32 %v278_v17, %v272_v14  ;;  %v294_v14 = vld [vmem:[#allocation5 + $0x188] sm:$0xff] }
 0x1a9   :  { %v236_v5 = vpop.f32.mrf.mxu1 }
 0x1aa   :  { %v630_v11 = vmax.f32 %v236_v5, 0.0 }
 0x1ac   :  { %v273_v19 = vmul.f32 %v630_v11, %v630_v11  ;;  %v259_v23 = vadd.f32 %v258_v18, %v630_v11 }
 0x1ae   :  { %v280_v28 = vadd.f32 %v279_v22, %v273_v19 }
 0x1b1   :  { %v239_v8 = vpop.f32.mrf.mxu1 }
 0x1b2   :  { %v635_v15 = vmax.f32 %v239_v8, 0.0 }
 0x1b4   :  { %v274_v24 = vmul.f32 %v635_v15, %v635_v15  ;;  %v260_v32 = vadd.f32 %v259_v23, %v635_v15 }
 0x1b6   :  { %v281_v36 = vadd.f32 %v280_v28, %v274_v24 }
 0x1b9   :  { %v242_v26 = vpop.f32.mrf.mxu1 }
 0x1ba   :  { %v646_v33 = vmax.f32 %v242_v26, 0.0 }
 0x1bc   :  { %v261_v37 = vadd.f32 %v260_v32, %v646_v33  ;;  %v275_v39 = vmul.f32 %v646_v33, %v646_v33 }
 0x1be   :  { %v262_v42 = vadd.f32 %v261_v37, %v643_v27  ;;  %v282_v43 = vadd.f32 %v281_v36, %v275_v39 }
 0x1c0   :  { %v263_v45 = vrot.slane %v262_v42, 4  ;;  %v283_v46 = vadd.f32 %v282_v43, %v276_v41 }
 0x1c2   :  { %v264_v48 = vadd.f32 %v263_v45, %v262_v42  ;;  %v284_v50 = vrot.slane %v283_v46, 4 }
 0x1c4   :  { %v265_v52 = vrot.slane %v264_v48, 2  ;;  %v285_v55 = vadd.f32 %v284_v50, %v283_v46 }
 0x1c6   :  { %v266_v57 = vadd.f32 %v265_v52, %v264_v48  ;;  %v286_v58 = vrot.slane %v285_v55, 2 }
 0x1c8   :  { %v267_v60 = vrot.slane %v266_v57, 1  ;;  %v287_v61 = vadd.f32 %v286_v58, %v285_v55 }
 0x1ca   :  { %v268_v54 = vadd.f32 %v267_v60, %v266_v57  ;;  %v288_v63 = vrot.slane %v287_v61, 1 }
 0x1cc   :  { %v289_v0 = vadd.f32 %v288_v63, %v287_v61  ;;  %v290_v29 = vmul.f32 0.015625, %v268_v54 }
 0x1ce   :  { %v291_v2 = vmul.f32 0.015625, %v289_v0  ;;  %v292_v31 = vmul.f32 %v290_v29, %v290_v29 }
 0x1d0   :  { %v293_v5 = vsub.f32 %v291_v2, %v292_v31 }
 0x1d2   :  { %v295_v8 = vadd.f32 1e-05, %v293_v5 }
 0x1d4   :  { %454 = vrsqrt.f32 %v295_v8  ;;  %vm302_vm4 = vweird.f32 %v295_v8 }
 0x1da   :  { %v455_v49 = vpop.eup %454 }
 0x1db   :  { %v297_v9 = vmul.f32 %v455_v49, %v295_v8  ;;  %vm303_vm3 = vweird.f32 %v455_v49 }
 0x1dc   :  { %vm304_vm5 = vmor %vm302_vm4, %vm303_vm3 }
 0x1dd   :  { %v298_v10 = vmul.f32 %v455_v49, %v297_v9 }
 0x1df   :  { %v299_v12 = vmul.f32 0.5, %v298_v10 }
 0x1e1   :  { %v300_v13 = vsub.f32 1.5, %v299_v12 }
 0x1e3   :  { %v301_v16 = vmul.f32 %v455_v49, %v300_v13 }
 0x1e5   :  { %v305_v17 = vsel %vm304_vm5, %v455_v49, %v301_v16 }
 0x1e6   :  { %v306_v18 = vmul.f32 %v305_v17, %v294_v14 }
 0x1e8   :  { %v307_v19 = vmul.f32 %v306_v18, %v290_v29  ;;  %v312_v21 = vperm.slane %v306_v18, 0 }
 0x1ea   :  { %v309_v20 = vrot.slane %v307_v19, 7  ;;  %v313_v24 = vmul.f32 %v312_v21, %v616_v6  ;;  %v314_v26 = vmul.f32 %v312_v21, %v614_v34  ;;  %v315_v32 = vmul.f32 %v312_v21, %v618_v38 }
 0x1eb   :  { %v316_v36 = vmul.f32 %v312_v21, %v622_v7  ;;  %v317_v39 = vmul.f32 %v312_v21, %v630_v11  ;;  %v318_v6 = vmul.f32 %v312_v21, %v635_v15  ;;  %v319_v34 = vmul.f32 %v312_v21, %v646_v33 }
 0x1ec   :  { %v311_v22 = vsub.f32 %v294_v14, %v309_v20  ;;  %v320_v38 = vmul.f32 %v312_v21, %v643_v27 }
 0x1ee   :  { %v321_v23 = vperm.slane %v311_v22, 1 }
 0x1f0   :  { %v322_v25 = vadd.f32 %v321_v23, %v313_v24  ;;  %v323_v28 = vadd.f32 %v321_v23, %v314_v26  ;;  %v324_v35 = vadd.f32 %v321_v23, %v315_v32  ;;  %v325_v37 = vadd.f32 %v321_v23, %v316_v36 }
 0x1f1   :  { %v326_v40 = vadd.f32 %v321_v23, %v317_v39  ;;  %v327_v41 = vadd.f32 %v321_v23, %v318_v6  ;;  %v328_v42 = vadd.f32 %v321_v23, %v319_v34  ;;  %v329_v43 = vadd.f32 %v321_v23, %v320_v38 }
 0x1f2   :  { %362 = vmatmul.f32.vlgmr.msra.gmra.mxu2 %v322_v25 }
 0x1fa   :  { %365 = vmatmul.f32.gmra.mxu2 %v323_v28 }
 0x202   :  { %368 = vmatmul.f32.gmra.mxu2 %v324_v35 }
 0x20a   :  { %371 = vmatmul.f32.gmra.mxu2 %v325_v37 }
 0x212   :  { %374 = vmatmul.f32.gmra.mxu2 %v326_v40 }
 0x21a   :  { %377 = vmatmul.f32.gmra.mxu2 %v327_v41 }
 0x222   :  { %380 = vmatmul.f32.gmra.mxu2 %v328_v42 }
 0x22a   :  { %383 = vmatmul.f32.gmra.mxu2 %v329_v43 }
 0x275   :  { %v363_v44 = vpop.f32.mrf.mxu2 }
 0x276   :  { %387 = vst [vmem:[#allocation7] sm:$0xff] %v363_v44 }
 0x27d   :  { %v366_v7 = vpop.f32.mrf.mxu2 }
 0x27e   :  { %388 = vst [vmem:[#allocation7 + $0x8] sm:$0xff] %v366_v7 }
 0x285   :  { %v369_v45 = vpop.f32.mrf.mxu2 }
 0x286   :  { %389 = vst [vmem:[#allocation7 + $0x10] sm:$0xff] %v369_v45 }
 0x28d   :  { %v372_v11 = vpop.f32.mrf.mxu2 }
 0x28e   :  { %390 = vst [vmem:[#allocation7 + $0x18] sm:$0xff] %v372_v11 }
 0x295   :  { %v375_v46 = vpop.f32.mrf.mxu2 }
 0x296   :  { %391 = vst [vmem:[#allocation7 + $0x20] sm:$0xff] %v375_v46 }
 0x29d   :  { %v378_v15 = vpop.f32.mrf.mxu2 }
 0x29e   :  { %392 = vst [vmem:[#allocation7 + $0x28] sm:$0xff] %v378_v15 }
 0x2a5   :  { %v381_v47 = vpop.f32.mrf.mxu2 }
 0x2a6   :  { %393 = vst [vmem:[#allocation7 + $0x30] sm:$0xff] %v381_v47 }
 0x2ad   :  { %v384_v27 = vpop.f32.mrf.mxu2 }
 0x2ae   :  { %394 = vst [vmem:[#allocation7 + $0x38] sm:$0xff] %v384_v27 }
 0x2af   :  { %407 = dma.vmem_to_hbm [thread:$0]  %s400_s1, 1024, %s402_s23, [#allocation4], %s535_s17, %s535_s17, %s536_s18  }
 0x2b0   :  { %532 = dma.done.wait [#allocation4], 1024  }
 0x2b1   :  { %533 = vsyncadd [#allocation4], 4294966272 }
 0x2b2   :  { %412 = vsyncpa [#allocation3], 1 }
 0x2b3   :  { %413 = vsyncpa [#allocation6], 1 }
 0x2b4   :  { %414 = vsyncpa [#allocation4], 1 }

</bundles_post_ra>
